<compile_context>
chip_gen: v7x
topology: tpu7x:2x2x1
jax: 0.10.0
libtpu: 0.0.40
codegen_flags: <defaults>
</compile_context>

<pallas_src>
import functools

import jax
import jax.numpy as jnp
from jax.experimental import pallas as pl
from jax.experimental.pallas import tpu as pltpu


def _rpn_head_kernel(x_ref, wconv_ref, bconv_ref, whead_ref, bhead_ref, out_ref,
                     *, C, W, TH):
    # x_ref     : (1, 1, (TH+2)*W, C) bf16  halo'd, W-padded, flattened row band
    # wconv_ref : (3, C, 3C)          bf16  3x3 conv weights, dx-fused: [dy][cin, dx*C+cout]
    # bconv_ref : (1, C)              f32
    # whead_ref : (C, P)              bf16  [cls | bbox | zero-pad] fused 1x1 heads
    # bhead_ref : (1, P)              f32
    # out_ref   : (1, 1, TH*W, P)     f32   fused head output (lane-dense)
    THW = TH * W

    # --- 3x3 conv: 3 MXU matmuls (one per dy tap), dx taps fused along N ------
    # psum[:, dx*C:(dx+1)*C] = sum_dy  band_dy @ Wconv[dy, dx]
    psum = None
    for dy in range(3):
        band = x_ref[0, 0, pl.ds(dy * W, THW), :]            # (THW, C) bf16, aligned (W%8==0)
        z = jnp.dot(band, wconv_ref[dy],
                    preferred_element_type=jnp.float32)      # (THW, 3C) f32
        psum = z if psum is None else psum + z

    # --- combine dx taps: sublane roll (XLU) + zero the row borders -----------
    # out[h,w] = p1[h,w] + p0[h,w-1]*(w>0) + p2[h,w+1]*(w<W-1)
    w_idx = jax.lax.broadcasted_iota(jnp.int32, (THW, 1), 0) % W     # (THW, 1)
    acc = psum[:, C:2 * C]
    left = pltpu.roll(psum[:, 0:C], 1, 0)                    # left[i]  = p0[i-1]
    acc = acc + jnp.where(w_idx == 0, 0.0, left)
    right = pltpu.roll(psum[:, 2 * C:3 * C], THW - 1, 0)     # right[i] = p2[i+1]
    acc = acc + jnp.where(w_idx == W - 1, 0.0, right)

    # --- bias + ReLU in f32, then the fused 1x1 heads (single wide matmul) ----
    t = jnp.maximum(acc + bconv_ref[...], 0.0)               # (THW, C) f32
    head = jnp.dot(t.astype(jnp.bfloat16), whead_ref[...],
                   preferred_element_type=jnp.float32) + bhead_ref[...]
    out_ref[0, 0] = head.astype(out_ref.dtype)               # (THW, P)


def _pick_tile_h(H, W_pad, C, P):
    """Largest row tile whose double-buffered blocks + f32 conv intermediates
    stay well under the smallest per-core VMEM (v7x: 64 MiB physical).
    TODO(synk): sweep per generation — v5e/v6e have 128 MiB VMEM and can take
    larger tiles than this v7x-safe default."""
    budget = 20 * 1024 * 1024
    best = 8
    for th in (8, 16, 32, 64, 128, 256, 512):
        in_b = 2 * (th + 2) * W_pad * C * 2        # bf16 input block, double buffered
        out_b = 2 * th * W_pad * P * 4             # f32 output block, double buffered
        mid_b = th * W_pad * (3 * C + 2 * C) * 4   # f32 psum + acc/t intermediates
        if in_b + out_b + mid_b <= budget:
            best = th
    return max(1, min(best, H))


@functools.partial(jax.jit, static_argnames=("tile_h",))
def rpn_head_single_level(x_nchw, params, tile_h=None):
    """Run the fused RPN head on one feature level. x_nchw: (N, C, H, W)."""
    wconv, bconv, wcls, bcls, wbox, bbox_bias = params
    N, C, H, W = x_nchw.shape
    A = wcls.shape[1]
    A4 = wbox.shape[1]
    A5 = A + A4
    P = ((A5 + 127) // 128) * 128                  # lane-dense fused head width
    W_pad = ((W + 7) // 8) * 8                     # sublane-aligned dy band slices
    if tile_h is None:
        tile_h = _pick_tile_h(H, W_pad, C, P)
    n_tiles = -(-H // tile_h)
    H_pad = n_tiles * tile_h
    THW = tile_h * W_pad

    # Wrapper-side relayout: NCHW->NHWC, zero-pad W to W_pad, zero-pad H with
    # the conv's top row + bottom rows up to H_pad+1, gather overlapping
    # (tile_h+2)-row halo'd bands, flatten, cast to bf16.
    # TODO(synk): accept channels-last features upstream (or DMA per channel
    # block inside the kernel) to avoid this HBM round trip before the kernel.
    x_nhwc = jnp.transpose(x_nchw, (0, 2, 3, 1))
    x_padded = jnp.pad(
        x_nhwc, ((0, 0), (1, H_pad - H + 1), (0, W_pad - W), (0, 0)))
    row_idx = (jnp.arange(n_tiles)[:, None] * tile_h
               + jnp.arange(tile_h + 2)[None, :])
    x_tiled = x_padded[:, row_idx]                 # (N, n_tiles, tile_h+2, W_pad, C)
    x_flat = x_tiled.reshape(
        N, n_tiles, (tile_h + 2) * W_pad, C).astype(jnp.bfloat16)

    # Weight prep (tiny; once per call).
    # 3x3 conv weights with the dx taps fused along cout: wdx[dy][cin, dx*C+cout].
    wdx = jnp.transpose(wconv, (0, 2, 1, 3)).reshape(3, C, 3 * C).astype(jnp.bfloat16)
    bconv2 = bconv.reshape(1, C).astype(jnp.float32)
    whead = jnp.concatenate([wcls, wbox], axis=1)                  # (C, 5A)
    whead = jnp.pad(whead, ((0, 0), (0, P - A5))).astype(jnp.bfloat16)
    bhead = jnp.concatenate([bcls, bbox_bias])                     # (5A,)
    bhead = jnp.pad(bhead, (0, P - A5)).reshape(1, P).astype(jnp.float32)

    grid_spec = pltpu.PrefetchScalarGridSpec(
        num_scalar_prefetch=0,
        grid=(N, n_tiles),
        in_specs=[
            pl.BlockSpec((1, 1, (tile_h + 2) * W_pad, C),
                         lambda n, t: (n, t, 0, 0)),
            # Constant index maps: weights/biases stay VMEM-resident across the grid.
            pl.BlockSpec((3, C, 3 * C), lambda n, t: (0, 0, 0)),
            pl.BlockSpec((1, C), lambda n, t: (0, 0)),
            pl.BlockSpec((C, P), lambda n, t: (0, 0)),
            pl.BlockSpec((1, P), lambda n, t: (0, 0)),
        ],
        out_specs=pl.BlockSpec((1, 1, THW, P), lambda n, t: (n, t, 0, 0)),
    )

    out = pl.pallas_call(
        functools.partial(_rpn_head_kernel, C=C, W=W_pad, TH=tile_h),
        out_shape=jax.ShapeDtypeStruct((N, n_tiles, THW, P), x_nchw.dtype),
        grid_spec=grid_spec,
        compiler_params=pltpu.CompilerParams(
            dimension_semantics=("parallel", "parallel"),
            vmem_limit_bytes=64 * 1024 * 1024),
    )(x_flat, wdx, bconv2, whead, bhead)

    # Split the fused, lane/space-padded head output and restore NCHW.
    # TODO(synk): on v5e consider a bf16 out_shape to halve the P=128 writeback.
    out = out.reshape(N, H_pad, W_pad, P)[:, :H, :W]
    logits = jnp.transpose(out[..., :A], (0, 3, 1, 2))             # (N, A, H, W)
    bbox_reg = jnp.transpose(out[..., A:A5], (0, 3, 1, 2))         # (N, 4A, H, W)
    return logits, bbox_reg


def rpn_head_forward(features, params, tile_h=None):
    """features: list of NCHW feature maps. Returns (logits_list, bbox_list)."""
    logits, bbox_reg = [], []
    for feat in features:
        lg, bb = rpn_head_single_level(feat, params, tile_h=tile_h)
        logits.append(lg)
        bbox_reg.append(bb)
    return logits, bbox_reg


def init_rpn_head_params(key, in_channels, num_anchors):
    """Deterministic init mirroring the PyTorch __init__ (normal std=0.01, bias=0)."""
    k1, k2, k3 = jax.random.split(key, 3)
    wconv = 0.01 * jax.random.normal(
        k1, (3, 3, in_channels, in_channels), jnp.float32)          # HWIO
    bconv = jnp.zeros((in_channels,), jnp.float32)
    wcls = 0.01 * jax.random.normal(
        k2, (in_channels, num_anchors), jnp.float32)                # 1x1 conv as matmul
    bcls = jnp.zeros((num_anchors,), jnp.float32)
    wbox = 0.01 * jax.random.normal(
        k3, (in_channels, num_anchors * 4), jnp.float32)
    bbox_bias = jnp.zeros((num_anchors * 4,), jnp.float32)
    return (wconv, bconv, wcls, bcls, wbox, bbox_bias)


def _reference_forward(x_nchw, params):
    """Pure-JAX f32 reference (lax.conv) for correctness checking."""
    wconv, bconv, wcls, bcls, wbox, bbox_bias = params
    dn = jax.lax.conv_dimension_numbers(x_nchw.shape, wconv.shape,
                                        ('NCHW', 'HWIO', 'NCHW'))
    t = jax.lax.conv_general_dilated(x_nchw, wconv, (1, 1), 'SAME',
                                     dimension_numbers=dn)
    t = jnp.maximum(t + bconv[None, :, None, None], 0.0)
    wcls4 = wcls.T[:, :, None, None]   # (A, C, 1, 1) -> OIHW
    wbox4 = wbox.T[:, :, None, None]
    dn1 = jax.lax.conv_dimension_numbers(t.shape, wcls4.shape,
                                         ('NCHW', 'OIHW', 'NCHW'))
    lg = jax.lax.conv_general_dilated(t, wcls4, (1, 1), 'VALID',
                                      dimension_numbers=dn1)
    lg = lg + bcls[None, :, None, None]
    dn2 = jax.lax.conv_dimension_numbers(t.shape, wbox4.shape,
                                         ('NCHW', 'OIHW', 'NCHW'))
    bb = jax.lax.conv_general_dilated(t, wbox4, (1, 1), 'VALID',
                                      dimension_numbers=dn2)
    bb = bb + bbox_bias[None, :, None, None]
    return lg, bb


if __name__ == "__main__":
    key = jax.random.PRNGKey(0)
    k_params, k_x1, k_x2 = jax.random.split(key, 3)

    batch, in_channels, num_anchors = 2, 32, 4
    params = init_rpn_head_params(k_params, in_channels, num_anchors)

    # Two feature levels: one aligned (16x16), one exercising W%8!=0 padding
    # and a ragged last row tile (10x12).  tile_h=8 exercises multi-tile halos.
    x1 = jax.random.normal(k_x1, (batch, in_channels, 16, 16), jnp.float32)
    x2 = jax.random.normal(k_x2, (batch, in_channels, 10, 12), jnp.float32)
    features = [x1, x2]

    logits, bbox_reg = rpn_head_forward(features, params, tile_h=8)
    logits = [jax.block_until_ready(l) for l in logits]
    bbox_reg = [jax.block_until_ready(b) for b in bbox_reg]

    assert logits[0].shape == (batch, num_anchors, 16, 16)
    assert bbox_reg[0].shape == (batch, num_anchors * 4, 16, 16)
    assert logits[1].shape == (batch, num_anchors, 10, 12)
    assert bbox_reg[1].shape == (batch, num_anchors * 4, 10, 12)

    # Correctness vs f32 lax.conv reference (kernel matmuls run in bf16 with
    # f32 accumulation, so tolerances are loosened accordingly).
    for x, lg, bb in zip(features, logits, bbox_reg):
        ref_lg, ref_bb = _reference_forward(x, params)
        assert jnp.allclose(lg, ref_lg, atol=1e-2, rtol=1e-2)
        assert jnp.allclose(bb, ref_bb, atol=1e-2, rtol=1e-2)

    print("KERNEL_OK")
</pallas_src>

<mosaic_0001>
module attributes {stable_mosaic.version = 11 : i64} {
  func.func @_rpn_head_kernel(%arg0: i32, %arg1: i32, %arg2: memref<1x1x160x32xbf16, #tpu.memory_space<vmem>>, %arg3: memref<3x32x96xbf16, #tpu.memory_space<vmem>>, %arg4: memref<1x32xf32, #tpu.memory_space<vmem>>, %arg5: memref<32x128xbf16, #tpu.memory_space<vmem>>, %arg6: memref<1x128xf32, #tpu.memory_space<vmem>>, %arg7: memref<1x1x128x128xf32, #tpu.memory_space<vmem>>) attributes {dimension_semantics = [#tpu.dimension_semantics<parallel>, #tpu.dimension_semantics<parallel>], iteration_bounds = array<i64: 2, 2>, scalar_prefetch = 0 : i64, scratch_operands = 0 : i64, tpu.core_type = #tpu.core_type<tc>, window_params = [{transform_indices = @transform_0, window_bounds = array<i64: 1, 1, 160, 32>}, {pipeline_mode = #tpu.pipeline_mode<synchronous>, transform_indices = @transform_1, window_bounds = array<i64: 3, 32, 96>}, {pipeline_mode = #tpu.pipeline_mode<synchronous>, transform_indices = @transform_2, window_bounds = array<i64: 1, 32>}, {pipeline_mode = #tpu.pipeline_mode<synchronous>, transform_indices = @transform_3, window_bounds = array<i64: 32, 128>}, {pipeline_mode = #tpu.pipeline_mode<synchronous>, transform_indices = @transform_4, window_bounds = array<i64: 1, 128>}, {transform_indices = @transform_5, window_bounds = array<i64: 1, 1, 128, 128>}]} {
    %c0 = arith.constant 0 : index
    %c0_0 = arith.constant 0 : index
    %c0_1 = arith.constant 0 : index
    %c0_2 = arith.constant 0 : index
    %0 = vector.load %arg2[%c0, %c0_0, %c0_1, %c0_2] : memref<1x1x160x32xbf16, #tpu.memory_space<vmem>>, vector<1x1x128x32xbf16>
    %1 = vector.shape_cast %0 : vector<1x1x128x32xbf16> to vector<128x32xbf16>
    %c0_3 = arith.constant 0 : index
    %c0_4 = arith.constant 0 : index
    %c0_5 = arith.constant 0 : index
    %2 = vector.load %arg3[%c0_3, %c0_4, %c0_5] : memref<3x32x96xbf16, #tpu.memory_space<vmem>>, vector<1x32x96xbf16>
    %3 = vector.shape_cast %2 : vector<1x32x96xbf16> to vector<32x96xbf16>
    %cst = arith.constant dense<0.000000e+00> : vector<128x96xf32>
    %4 = tpu.matmul %1, %3, %cst {dimension_numbers = #tpu.dot_dimension_numbers<[1], [0], [0], [1], [0, 0, 1, 1], [], []>} : vector<128x32xbf16>, vector<32x96xbf16>, vector<128x96xf32> -> vector<128x96xf32>
    %c0_6 = arith.constant 0 : index
    %c0_7 = arith.constant 0 : index
    %c16 = arith.constant 16 : index
    %c0_8 = arith.constant 0 : index
    %5 = vector.load %arg2[%c0_6, %c0_7, %c16, %c0_8] : memref<1x1x160x32xbf16, #tpu.memory_space<vmem>>, vector<1x1x128x32xbf16>
    %6 = vector.shape_cast %5 : vector<1x1x128x32xbf16> to vector<128x32xbf16>
    %c1 = arith.constant 1 : index
    %c0_9 = arith.constant 0 : index
    %c0_10 = arith.constant 0 : index
    %7 = vector.load %arg3[%c1, %c0_9, %c0_10] : memref<3x32x96xbf16, #tpu.memory_space<vmem>>, vector<1x32x96xbf16>
    %8 = vector.shape_cast %7 : vector<1x32x96xbf16> to vector<32x96xbf16>
    %cst_11 = arith.constant dense<0.000000e+00> : vector<128x96xf32>
    %9 = tpu.matmul %6, %8, %cst_11 {dimension_numbers = #tpu.dot_dimension_numbers<[1], [0], [0], [1], [0, 0, 1, 1], [], []>} : vector<128x32xbf16>, vector<32x96xbf16>, vector<128x96xf32> -> vector<128x96xf32>
    %10 = arith.addf %4, %9 : vector<128x96xf32>
    %c0_12 = arith.constant 0 : index
    %c0_13 = arith.constant 0 : index
    %c32 = arith.constant 32 : index
    %c0_14 = arith.constant 0 : index
    %11 = vector.load %arg2[%c0_12, %c0_13, %c32, %c0_14] : memref<1x1x160x32xbf16, #tpu.memory_space<vmem>>, vector<1x1x128x32xbf16>
    %12 = vector.shape_cast %11 : vector<1x1x128x32xbf16> to vector<128x32xbf16>
    %c2 = arith.constant 2 : index
    %c0_15 = arith.constant 0 : index
    %c0_16 = arith.constant 0 : index
    %13 = vector.load %arg3[%c2, %c0_15, %c0_16] : memref<3x32x96xbf16, #tpu.memory_space<vmem>>, vector<1x32x96xbf16>
    %14 = vector.shape_cast %13 : vector<1x32x96xbf16> to vector<32x96xbf16>
    %cst_17 = arith.constant dense<0.000000e+00> : vector<128x96xf32>
    %15 = tpu.matmul %12, %14, %cst_17 {dimension_numbers = #tpu.dot_dimension_numbers<[1], [0], [0], [1], [0, 0, 1, 1], [], []>} : vector<128x32xbf16>, vector<32x96xbf16>, vector<128x96xf32> -> vector<128x96xf32>
    %16 = arith.addf %10, %15 : vector<128x96xf32>
    %17 = tpu.iota {dimensions = array<i32: 0>} : vector<128x1xi32>
    %c16_i32 = arith.constant 16 : i32
    %c0_i32 = arith.constant 0 : i32
    %18 = arith.cmpi eq, %c16_i32, %c0_i32 : i32
    %c1_i32 = arith.constant 1 : i32
    %19 = arith.select %18, %c1_i32, %c16_i32 : i32
    %20 = vector.broadcast %19 : i32 to vector<128x1xi32>
    %21 = arith.remsi %17, %20 : vector<128x1xi32>
    %c0_i32_18 = arith.constant 0 : i32
    %22 = vector.broadcast %c0_i32_18 : i32 to vector<128x1xi32>
    %23 = arith.cmpi ne, %21, %22 : vector<128x1xi32>
    %c0_i32_19 = arith.constant 0 : i32
    %24 = vector.broadcast %c0_i32_19 : i32 to vector<128x1xi32>
    %25 = arith.cmpi slt, %21, %24 : vector<128x1xi32>
    %c0_i32_20 = arith.constant 0 : i32
    %26 = arith.cmpi slt, %19, %c0_i32_20 : i32
    %27 = vector.broadcast %26 : i1 to vector<128x1xi1>
    %28 = vector.broadcast %27 : vector<128x1xi1> to vector<128x1xi1>
    %29 = arith.xori %25, %28 : vector<128x1xi1>
    %30 = arith.andi %29, %23 : vector<128x1xi1>
    %31 = vector.broadcast %19 : i32 to vector<128x1xi32>
    %32 = arith.addi %21, %31 : vector<128x1xi32>
    %33 = arith.select %30, %32, %21 : vector<128x1xi1>, vector<128x1xi32>
    %34 = vector.extract_strided_slice %16 {offsets = [0, 32], sizes = [128, 32], strides = [1, 1]} : vector<128x96xf32> to vector<128x32xf32>
    %35 = vector.extract_strided_slice %16 {offsets = [0, 0], sizes = [128, 32], strides = [1, 1]} : vector<128x96xf32> to vector<128x32xf32>
    %c1_i32_21 = arith.constant 1 : i32
    %36 = tpu.dynamic_rotate %35 by %c1_i32_21 dim 0 : vector<128x32xf32>, i32 -> vector<128x32xf32>
    %c0_i32_22 = arith.constant 0 : i32
    %37 = vector.broadcast %c0_i32_22 : i32 to vector<128x1xi32>
    %38 = arith.cmpi eq, %33, %37 : vector<128x1xi32>
    %cst_23 = arith.constant 0.000000e+00 : f32
    %39 = vector.shape_cast %38 : vector<128x1xi1> to vector<128x1xi1>
    %40 = vector.broadcast %39 : vector<128x1xi1> to vector<128x32xi1>
    %41 = vector.broadcast %cst_23 : f32 to vector<128x32xf32>
    %42 = arith.select %40, %41, %36 : vector<128x32xi1>, vector<128x32xf32>
    %43 = arith.addf %34, %42 : vector<128x32xf32>
    %44 = vector.extract_strided_slice %16 {offsets = [0, 64], sizes = [128, 32], strides = [1, 1]} : vector<128x96xf32> to vector<128x32xf32>
    %c127_i32 = arith.constant 127 : i32
    %45 = tpu.dynamic_rotate %44 by %c127_i32 dim 0 : vector<128x32xf32>, i32 -> vector<128x32xf32>
    %c15_i32 = arith.constant 15 : i32
    %46 = vector.broadcast %c15_i32 : i32 to vector<128x1xi32>
    %47 = arith.cmpi eq, %33, %46 : vector<128x1xi32>
    %cst_24 = arith.constant 0.000000e+00 : f32
    %48 = vector.shape_cast %47 : vector<128x1xi1> to vector<128x1xi1>
    %49 = vector.broadcast %48 : vector<128x1xi1> to vector<128x32xi1>
    %50 = vector.broadcast %cst_24 : f32 to vector<128x32xf32>
    %51 = arith.select %49, %50, %45 : vector<128x32xi1>, vector<128x32xf32>
    %52 = arith.addf %43, %51 : vector<128x32xf32>
    %c0_25 = arith.constant 0 : index
    %c0_26 = arith.constant 0 : index
    %53 = vector.load %arg4[%c0_25, %c0_26] : memref<1x32xf32, #tpu.memory_space<vmem>>, vector<1x32xf32>
    %54 = vector.broadcast %53 : vector<1x32xf32> to vector<128x32xf32>
    %55 = arith.addf %52, %54 : vector<128x32xf32>
    %cst_27 = arith.constant 0.000000e+00 : f32
    %56 = vector.broadcast %cst_27 : f32 to vector<128x32xf32>
    %57 = arith.maximumf %55, %56 : vector<128x32xf32>
    %58 = arith.truncf %57 : vector<128x32xf32> to vector<128x32xbf16>
    %c0_28 = arith.constant 0 : index
    %c0_29 = arith.constant 0 : index
    %59 = vector.load %arg5[%c0_28, %c0_29] : memref<32x128xbf16, #tpu.memory_space<vmem>>, vector<32x128xbf16>
    %cst_30 = arith.constant dense<0.000000e+00> : vector<128x128xf32>
    %60 = tpu.matmul %58, %59, %cst_30 {dimension_numbers = #tpu.dot_dimension_numbers<[1], [0], [0], [1], [0, 0, 1, 1], [], []>} : vector<128x32xbf16>, vector<32x128xbf16>, vector<128x128xf32> -> vector<128x128xf32>
    %c0_31 = arith.constant 0 : index
    %c0_32 = arith.constant 0 : index
    %61 = vector.load %arg6[%c0_31, %c0_32] : memref<1x128xf32, #tpu.memory_space<vmem>>, vector<1x128xf32>
    %62 = vector.broadcast %61 : vector<1x128xf32> to vector<128x128xf32>
    %63 = arith.addf %60, %62 : vector<128x128xf32>
    %c0_33 = arith.constant 0 : index
    %c0_34 = arith.constant 0 : index
    %c0_35 = arith.constant 0 : index
    %c0_36 = arith.constant 0 : index
    %64 = vector.load %arg7[%c0_33, %c0_34, %c0_35, %c0_36] : memref<1x1x128x128xf32, #tpu.memory_space<vmem>>, vector<1x1x128x128xf32>
    %65 = vector.shape_cast %64 : vector<1x1x128x128xf32> to vector<128x128xf32>
    %66 = vector.shape_cast %63 : vector<128x128xf32> to vector<1x1x128x128xf32>
    tpu.vector_store %arg7[%c0_33, %c0_34, %c0_35, %c0_36], %66 {strides = array<i32>} : memref<1x1x128x128xf32, #tpu.memory_space<vmem>>, vector<1x1x128x128xf32>,
    return
  }
  func.func @transform_0(%arg0: i32, %arg1: i32) -> (i32, i32, i32, i32) {
    %c0_i32 = arith.constant 0 : i32
    %c0_i32_0 = arith.constant 0 : i32
    %c0_i32_1 = arith.constant 0 : i32
    return %arg0, %arg1, %c0_i32, %c0_i32_0 : i32, i32, i32, i32
  }
  func.func @transform_1(%arg0: i32, %arg1: i32) -> (i32, i32, i32) {
    %c0_i32 = arith.constant 0 : i32
    %c0_i32_0 = arith.constant 0 : i32
    %c0_i32_1 = arith.constant 0 : i32
    %c0_i32_2 = arith.constant 0 : i32
    return %c0_i32, %c0_i32_0, %c0_i32_1 : i32, i32, i32
  }
  func.func @transform_2(%arg0: i32, %arg1: i32) -> (i32, i32) {
    %c0_i32 = arith.constant 0 : i32
    %c0_i32_0 = arith.constant 0 : i32
    %c0_i32_1 = arith.constant 0 : i32
    return %c0_i32, %c0_i32_0 : i32, i32
  }
  func.func @transform_3(%arg0: i32, %arg1: i32) -> (i32, i32) {
    %c0_i32 = arith.constant 0 : i32
    %c0_i32_0 = arith.constant 0 : i32
    %c0_i32_1 = arith.constant 0 : i32
    return %c0_i32, %c0_i32_0 : i32, i32
  }
  func.func @transform_4(%arg0: i32, %arg1: i32) -> (i32, i32) {
    %c0_i32 = arith.constant 0 : i32
    %c0_i32_0 = arith.constant 0 : i32
    %c0_i32_1 = arith.constant 0 : i32
    return %c0_i32, %c0_i32_0 : i32, i32
  }
  func.func @transform_5(%arg0: i32, %arg1: i32) -> (i32, i32, i32, i32) {
    %c0_i32 = arith.constant 0 : i32
    %c0_i32_0 = arith.constant 0 : i32
    %c0_i32_1 = arith.constant 0 : i32
    return %arg0, %arg1, %c0_i32, %c0_i32_0 : i32, i32, i32, i32
  }
}

</mosaic_0001>

<bundles_post_ra>
// kernel: rpn_head_single_level.1
= control target key start
LH: loop header
LB: loop body
LE: loop exit
PB: predicated region body
PF: predicated region fallthrough
CT: control target
= control target key end

     0   :  { %s3201_s0 = inlined_call_operand.hbm [shape: bf16[2,2,160,32], index: 0, kind: input, shape index: {}]   ;;  %s3202_s1 = inlined_call_operand.hbm [shape: bf16[3,32,96], index: 1, kind: input, shape index: {}]   ;;  %s3203_s2 = inlined_call_operand.hbm [shape: f32[1,32], index: 2, kind: input, shape index: {}]   ;;  %s3204_s3 = inlined_call_operand.hbm [shape: bf16[32,128], index: 3, kind: input, shape index: {}]   ;;  %s3205_s4 = inlined_call_operand.hbm [shape: f32[1,128], index: 4, kind: input, shape index: {}]   ;;  %s3206_s5 = inlined_call_operand.hbm [shape: f32[2,2,128,128], index: 5, kind: output, shape index: {}]  }
   0x1   :  { %3216 = sst [smem:[#allocation19_spill]] %s3202_s1 }
   0x2   :  { %3217 = sst [smem:[#allocation20_spill]] %s3203_s2 }
   0x3   :  { %3218 = sst [smem:[#allocation21_spill]] %s3204_s3 }
   0x4   :  { %3219 = sst [smem:[#allocation22_spill]] %s3206_s5 }
   0x5   :  { %10 = vsyncpa [#allocation3], 0 }
   0x6   :  { %12 = vsyncpa [#allocation3 + $0x1], 0 }
   0x7   :  { %13 = vsyncpa [#allocation6], 0 }
   0x8   :  { %14 = vsyncpa [#allocation9], 0 }
   0x9   :  { %15 = vsyncpa [#allocation4], 0 }
   0xa   :  { %17 = vsyncpa [#allocation4 + $0x1], 0  ;;  %s2528_s18 = smov 0   ;;  %s2530_s19 = smov 0  }
   0xb   :  { %s2532_s20 = smov 0   ;;  %s2534_s21 = smov 0  }
   0xc   :  { %s2536_s22 = smov 0   ;;  %s2538_s23 = smov 0  }
   0xd   :  { %s2540_s24 = smov 0   ;;  %s2542_s25 = smov 0  }
   0xe LB: > { %3220 = sst [smem:[#allocation16_spill]] %s2455_s18  ;;  %s1848_s26 = sadd.s32 4294967295, %s2483_s25   ;;  %s2483_s25 = sphi %s2542_s25, %s23_s25   ;;  %s2479_s24 = sphi %s2540_s24, %s3253_s24   ;;  %s2475_s23 = sphi %s2538_s23, %s3252_s23   ;;  %s2471_s22 = sphi %s2536_s22, %s3251_s22   ;;  %s2467_s21 = sphi %s2534_s21, %s3250_s21   ;;  %s2463_s20 = sphi %s2532_s20, %s3249_s20   ;;  %s2459_s19 = sphi %s2530_s19, %s3248_s19   ;;  %s2455_s18 = sphi %s2528_s18, %s3247_s18  }
   0xf   : > { %3221 = sst [smem:[#allocation17_spill]] %s2471_s22  ;;  %s1849_s27 = sadd.s32 4294967294, %s2483_s25  }
  0x10   : > { %p57_p0 = scmp.ne.s32.totalorder %s2459_s19, %s2455_s18  ;;  %p2572_p1 = scmp.eq.s32.totalorder %s1848_s26, 0 }
  0x11   : > { %p2576_p2 = scmp.eq.s32.totalorder %s1848_s26, 3  ;;  %p173_p3 = scmp.eq.s32.totalorder %s1849_s27, 3 }
  0x12   : > { %s3222_s28 = scalar_select %p2572_p1, 1, 0 }
  0x13   : > { %s3223_s29 = scalar_select %p2576_p2, 1, 0 }
  0x14   : > { %p2582_p4 = por %p2572_p1, %p57_p0  ;;  %p1850_p5 = scmp.ge.s32.totalorder %s2483_s25, 1 }
  0x15   : > { %p2587_p6 = por %p173_p3, %p57_p0  ;;  %p180_p7 = scmp.lt.s32.totalorder %s2483_s25, 5 }
  0x16   : > { %s3224_s30 = scalar_select %p2582_p4, 1, 0 }
  0x17   : > { %s3225_s6 = scalar_select %p2587_p6, 1, 0 }
  0x18   : > { %p2592_p8 = pnand %p1850_p5, %p180_p7  ;;  %s2485_s8 = smov [#allocation5]  }
  0x19   : > { %3226 = sst [smem:[#allocation18_spill]] %s3225_s6  ;;  %s192_s9 = sshll.u32 %s2485_s8, 4  ;;  %s2596_s9 = int_to_ptr.vmem [resolvable:$true] %s192_s9 }
  0x1a   : > { %s3227_s7 = scalar_select %p2592_p8, 1, 0 }
  0x1b   : > { %p2104_p9 = pneg %p2592_p8  ;;  %s2486_s11 = smov [#allocation8]  }
  0x1c   : > { %s216_s12 = sshll.u32 %s2486_s11, 4  ;;  %s2487_s13 = smov [#allocation7]   ;;  %s2606_s12 = int_to_ptr.vmem [resolvable:$true] %s216_s12 }
  0x1d   : > { %p2602_p10 = pnand %p2104_p9, %p2572_p1  ;;  %s2608_s14 = sshll.u32 %s2487_s13, 4  ;;  %s207_s14 = int_to_ptr.vmem [resolvable:$true] %s2608_s14 }
  0x1e   : > { %s3229_s1 = sld [smem:[#allocation19_spill]] }
  0x1f   : > { %p2618_p12 = pneg %p2602_p10 }
  0x24   : > { %s2235_s17 = scalar_lea.hbm %s3229_s1, 768 }
  0x25   : > { %p2236_p11 = scmp.ne.s32.totalorder %s3229_s1, %s2235_s17  ;;  %p2242_p3 = scmp.lt.u32.totalorder %s2235_s17, %s3229_s1 }
  0x27   : > { %p2238_p13 = pnand %p2618_p12, %p2236_p11 }
  0x29   : > { %p2239_p0 = pneg %p2238_p13 }
  0x2b   : > { %p2244_p5 = pnand %p2242_p3, %p2239_p0 }
  0x2d   : > { %2247 = shalt.err (!%p2244_p5)
}
  0x2e   : > { %s2248_s15 = scalar_lea.vmem %s2596_s9, 768  ;;  %p2256_p1 = scmp.lt.s32.totalorder %s2596_s9, %s2596_s9 }
  0x2f   : > { %p2249_p7 = scmp.ne.s32.totalorder %s2596_s9, %s2248_s15  ;;  %p2257_p4 = scmp.lt.s32.totalorder %s2248_s15, %s2248_s15 }
  0x31   : > { %p2251_p9 = pnand %p2249_p7, %p2618_p12  ;;  %p2258_p11 = por %p2257_p4, %p2256_p1 }
  0x33   : > { %p2252_p6 = pneg %p2251_p9 }
  0x35   : > { %p2259_p13 = pnand %p2258_p11, %p2252_p6 }
  0x37   : > { %2262 = shalt.err (!%p2259_p13)
}
  0x38   : > { %s3214_s16 = smov 64   ;;  %s3215_s17 = smov 4  }
  0x39   : > { %2107 = dma.hbm_to_vmem [thread:$0]  (!%p2602_p10), %s3229_s1, 768, %s2596_s9, [#allocation6], %s3214_s16, %s3214_s16, %s3215_s17  }
  0x3a   : > { %s3231_s3 = sld [smem:[#allocation21_spill]] }
  0x40   : > { %s2263_s15 = scalar_lea.hbm %s3231_s3, 256 }
  0x41   : > { %p2264_p1 = scmp.ne.s32.totalorder %s3231_s3, %s2263_s15  ;;  %p2270_p0 = scmp.lt.u32.totalorder %s2263_s15, %s3231_s3 }
  0x43   : > { %p2266_p4 = pnand %p2264_p1, %p2618_p12 }
  0x45   : > { %p2267_p6 = pneg %p2266_p4 }
  0x47   : > { %p2272_p3 = pnand %p2270_p0, %p2267_p6 }
  0x49   : > { %2275 = shalt.err (!%p2272_p3)
}
  0x4a   : > { %s2276_s9 = scalar_lea.vmem %s2606_s12, 256  ;;  %p2284_p11 = scmp.lt.s32.totalorder %s2606_s12, %s2606_s12 }
  0x4b   : > { %p2277_p5 = scmp.ne.s32.totalorder %s2606_s12, %s2276_s9  ;;  %p2285_p13 = scmp.lt.s32.totalorder %s2276_s9, %s2276_s9 }
  0x4d   : > { %p2279_p7 = pnand %p2277_p5, %p2618_p12  ;;  %p2286_p1 = por %p2285_p13, %p2284_p11 }
  0x4f   : > { %p2280_p9 = pneg %p2279_p7 }
  0x51   : > { %p2287_p4 = pnand %p2286_p1, %p2280_p9 }
  0x53   : > { %2290 = shalt.err (!%p2287_p4)
}
  0x54   : > { %2113 = dma.hbm_to_vmem [thread:$0]  (!%p2602_p10), %s3231_s3, 256, %s2606_s12, [#allocation9], %s3214_s16, %s3214_s16, %s3215_s17  }
  0x55   : > { %s3232_s2 = sld [smem:[#allocation20_spill]] }
  0x5b   : > { %s2291_s26 = scalar_lea.hbm %s3232_s2, 16 }
  0x5c   : > { %p2292_p6 = scmp.ne.s32.totalorder %s3232_s2, %s2291_s26  ;;  %p2298_p5 = scmp.lt.u32.totalorder %s2291_s26, %s3232_s2 }
  0x5e   : > { %p2294_p0 = pnand %p2292_p6, %p2618_p12 }
  0x60   : > { %p2295_p3 = pneg %p2294_p0 }
  0x62   : > { %p2300_p7 = pnand %p2298_p5, %p2295_p3 }
  0x64   : > { %2303 = shalt.err (!%p2300_p7)
}
  0x65   : > { %s2304_s9 = scalar_lea.vmem %s207_s14, 16  ;;  %s2311_s12 = scalar_lea.vmem %s207_s14, 32 }
  0x66   : > { %p2305_p9 = scmp.ne.s32.totalorder %s207_s14, %s2304_s9  ;;  %p2312_p1 = scmp.lt.s32.totalorder %s207_s14, %s207_s14 }
  0x67   : > { %p2313_p4 = scmp.lt.s32.totalorder %s2311_s12, %s2304_s9 }
  0x68   : > { %p2307_p11 = pnand %p2305_p9, %p2618_p12 }
  0x69   : > { %p2314_p8 = por %p2313_p4, %p2312_p1 }
  0x6a   : > { %p2308_p13 = pneg %p2307_p11 }
  0x6c   : > { %p2315_p2 = pnand %p2314_p8, %p2308_p13 }
  0x6e   : > { %2318 = shalt.err (!%p2315_p2)
}
  0x6f   : > { %2110 = dma.hbm_to_vmem [thread:$0]  (!%p2602_p10), %s3232_s2, 16, %s207_s14, [#allocation6]  }
  0x70   : > { %s2490_s22 = smov [#allocation10]   ;;  %s2319_s11 = scalar_lea.hbm %s3205_s4, 16 }
  0x71   : > { %s230_s6 = sshll.u32 %s2490_s22, 4  ;;  %p2320_p6 = scmp.ne.s32.totalorder %s3205_s4, %s2319_s11  ;;  %s231_s6 = int_to_ptr.vmem [resolvable:$true] %s230_s6 }
  0x72   : > { %p2326_p0 = scmp.lt.u32.totalorder %s2319_s11, %s3205_s4 }
  0x73   : > { %p2322_p2 = pnand %p2320_p6, %p2618_p12 }
  0x75   : > { %p2323_p8 = pneg %p2322_p2 }
  0x77   : > { %p2328_p3 = pnand %p2326_p0, %p2323_p8 }
  0x79   : > { %2331 = shalt.err (!%p2328_p3)
}
  0x7a   : > { %s2332_s14 = scalar_lea.vmem %s231_s6, 16  ;;  %s2339_s5 = scalar_lea.vmem %s231_s6, 32 }
  0x7b   : > { %p2333_p5 = scmp.ne.s32.totalorder %s231_s6, %s2332_s14  ;;  %p2340_p11 = scmp.lt.s32.totalorder %s231_s6, %s231_s6 }
  0x7c   : > { %p2341_p13 = scmp.lt.s32.totalorder %s2339_s5, %s2332_s14 }
  0x7d   : > { %p2335_p7 = pnand %p2333_p5, %p2618_p12 }
  0x7e   : > { %p2342_p1 = por %p2341_p13, %p2340_p11 }
  0x7f   : > { %p2336_p9 = pneg %p2335_p7 }
  0x81   : > { %p2343_p4 = pnand %p2342_p1, %p2336_p9 }
  0x83   : > { %2346 = shalt.err (!%p2343_p4)
}
  0x84   : > { %2116 = dma.hbm_to_vmem [thread:$0]  (!%p2602_p10), %s3205_s4, 16, %s231_s6, [#allocation9]  }
  0x85   : > { %s32_s8 = sadd.s32 1, %s2475_s23  ;;  %s35_s26 = sadd.s32 1, %s2479_s24 }
  0x86   : > { %p33_p12 = scmp.ge.s32.totalorder %s32_s8, 2  ;;  %s44_s10 = sadd.s32 1, %s2463_s20 }
  0x87   : > { %p51_p6 = scmp.ne.s32.totalorder %s2463_s20, %s2459_s19  ;;  %p52_p2 = scmp.eq.s32.totalorder %s2483_s25, 0 }
  0x88   : > { %s3255_s8 = smov (%p33_p12, %s32_s8), 0  ;;  %s3257_s26 = smov (!%p33_p12, %s35_s26), %s2479_s24 }
  0x89   : > { %s40_s27 = ssub.s32 %s2475_s23, %s3255_s8  ;;  %p2716_p8 = por %p52_p2, %p51_p6 }
  0x8a   : > { %p37_p10 = scmp.ge.s32.totalorder %s3257_s26, 2  ;;  %p3234_p0 = scmp.ne.s32.totalorder %s3223_s29, 0 }
  0x8b   : > { %p2129_p5 = scmp.lt.s32.totalorder %s2483_s25, 4  ;;  %s241_s13 = sand.u32 1, %s2463_s20  }
  0x8c   : > { %p2722_p3 = por %p3234_p0, %p51_p6  ;;  %s3259_s26 = smov (%p37_p10, %s3257_s26), 0 }
  0x8d   : > { %s2080_s15 = smul.u32 80, %s241_s13  ;;  %s39_s9 = ssub.s32 %s2479_s24, %s3259_s26 }
  0x8e   : > { %s2081_s12 = smul.u32 20, %s2475_s23  ;;  %s41_s14 = sor.u32 %s40_s27, %s39_s9 }
  0x8f   : > { %p42_p7 = scmp.eq.s32.totalorder %s41_s14, 0  ;;  %s2082_s5 = smul.u32 40, %s2479_s24 }
  0x90   : > { %s245_s18 = scalar_lea.vmem [#allocation2], %s2080_s15  ;;  %p2736_p9 = pnand %p2129_p5, %p2716_p8 }
  0x91   : > { %s254_s22 = sshll.u32 %s245_s18, 4  ;;  %s251_s17 = sadd.s32 %s2082_s5, %s2081_s12  ;;  %s2743_s22 = int_to_ptr.vmem [resolvable:$true] %s254_s22 }
  0x92   : > { %s2741_s16 = scalar_select %p42_p7, %s2463_s20, %s44_s10  }
  0x93   : > { %s1856_s1 = sshll.u32 %s251_s17, 6  ;;  %s2750_s11 = scalar_lea.sflag [#allocation3], %s241_s13 }
  0x94   : > { %s2748_s27 = scalar_lea.hbm %s3201_s0, %s1856_s1  ;;  %p2349_p13 = pneg %p2736_p9 }
  0x95   : > { %s2347_s15 = scalar_lea.hbm %s2748_s27, 1280  ;;  %s2352_s2 = scalar_lea.hbm %s3201_s0, 5120 }
  0x96   : > { %p2348_p11 = scmp.ne.s32.totalorder %s2748_s27, %s2347_s15  ;;  %p2353_p12 = scmp.lt.u32.totalorder %s2748_s27, %s3201_s0 }
  0x97   : > { %p2354_p6 = scmp.lt.u32.totalorder %s2352_s2, %s2347_s15  ;;  %p2356_p8 = scmp.lt.u32.totalorder %s2347_s15, %s2748_s27 }
  0x98   : > { %p2350_p1 = pnand %p2349_p13, %p2348_p11 }
  0x99   : > { %p2355_p2 = por %p2354_p6, %p2353_p12 }
  0x9a   : > { %p2351_p4 = pneg %p2350_p1 }
  0x9b   : > { %p2357_p10 = por %p2356_p8, %p2355_p2 }
  0x9d   : > { %p2358_p0 = pnand %p2357_p10, %p2351_p4 }
  0x9f   : > { %2361 = shalt.err (!%p2358_p0)
}
  0xa0   : > { %s2362_s13 = scalar_lea.vmem %s2743_s22, 1280  ;;  %s2491_s9 = smov [#allocation2]  }
  0xa1   : > { %p2363_p5 = scmp.ne.s32.totalorder %s2743_s22, %s2362_s13  ;;  %s2367_s12 = sshll.u32 %s2491_s9, 4  ;;  %s2368_s12 = int_to_ptr.vmem [resolvable:$false] %s2367_s12 }
  0xa2   : > { %s2369_s14 = scalar_lea.vmem %s2368_s12, 2560  ;;  %p2370_p1 = scmp.lt.s32.totalorder %s2743_s22, %s2368_s12 }
  0xa3   : > { %p2365_p7 = pnand %p2363_p5, %p2349_p13  ;;  %p2371_p12 = scmp.lt.s32.totalorder %s2369_s14, %s2362_s13 }
  0xa5   : > { %p2366_p11 = pneg %p2365_p7  ;;  %p2372_p6 = por %p2371_p12, %p2370_p1 }
  0xa7   : > { %p2373_p2 = pnand %p2372_p6, %p2366_p11 }
  0xa9   : > { %2376 = shalt.err (!%p2373_p2)
}
  0xaa   : > { %s3237_s5 = smov 4   ;;  %s3238_s18 = smov 64  }
  0xab   : > { %2120 = dma.hbm_to_vmem [thread:$0]  (!%p2736_p9), %s2748_s27, 1280, %s2743_s22, %s2750_s11, %s3238_s18, %s3238_s18, %s3237_s5  }
  0xac   : > { %p3239_p13 = scmp.ne.s32.totalorder %s3227_s7, 0 }
  0xad   : > { %s2784_s15 = sand.u32 (!%p3239_p13), 1, %s2459_s19   ;;  %p3240_p4 = scmp.ne.s32.totalorder (!%p3239_p13), %s3224_s30, 0 }
  0xae   : > { %266 = sbr.rel (%p3239_p13) target bundleno = 1069 (0x42d), region = 40  ;;  %s269_s10 = scalar_lea.sflag (!%p3239_p13), [#allocation3], %s2784_s15 }
  0xaf   : > { %s2083_s17 = smul.u32 (!%p3239_p13), 80, %s2784_s15 }
  0xb1   : > { %s2788_s2 = scalar_lea.vmem (!%p3239_p13), [#allocation2], %s2083_s17 }
  0xb5   : > { %2438 = dma.done.wait (%p3240_p4), %s269_s10, 1280  }
  0xb6   : > { %2440 = vsyncadd (%p3240_p4), %s269_s10, 4294966016  ;;  %p3241_p9 = scmp.ne.s32.totalorder %s3222_s28, 0 }
  0xb8   : > { %2442 = dma.done.wait (%p3241_p9), [#allocation6], 784  }
  0xb9   : > { %2444 = vsyncadd (%p3241_p9), [#allocation6], 4294966512 }
  0xba   : > { %2446 = dma.done.wait (%p3241_p9), [#allocation9], 272  }
  0xbb   : > { %2448 = vsyncadd (%p3241_p9), [#allocation9], 4294967024  ;;  %v2210_v0 = vld [vmem:[#allocation5] sm:$0xff]   ;;  %v2211_v1 = vld [vmem:[#allocation5 + $0x8] sm:$0xff]   ;;  %vm395_vm0 = vcmask 261120   ;;  %s2492_s28 = smov 64   ;;  %v844_v56 = vlaneseq }
  0xbc   : > { %1988 = vmatprep.subr.bf16.mxu0 %v2210_v0  ;;  %v2212_v2 = vld [vmem:[%s2788_s2] sm:$0xff]   ;;  %v2213_v3 = vld [vmem:[%s2788_s2 + $0x8] sm:$0xff]   ;;  %v2215_v5 = vld [vmem:[%s2788_s2 + $0x10] sm:$0xff]   ;;  %s2493_s30 = smov 32   ;;  %s2494_s7 = smov 96  }
  0xbd   : > { %1989 = vmatpush3.bf16.msra.mxu0 %v2210_v0  ;;  %1992 = vmatprep.mubr.msk.bf16.mxu0 %vm395_vm0, %v2212_v2  ;;  %v2214_v4 = vld [vmem:[#allocation5 + $0x20] sm:$0xff]   ;;  %v2219_v6 = vld [vmem:[#allocation5 + $0x28] sm:$0xff]   ;;  %v2220_v7 = vld [vmem:[#allocation5 + $0x10] sm:$0xff]   ;;  %v2885_v0 = vshrl.u32 %v844_v56, 7  ;;  %s1862_s22 = sshll.u32 %s2784_s15, 7  ;;  %s3242_s27 = sld [smem:[#allocation17_spill]] }
  0xbe   : > { %1990 = vmatprep.subr.bf16.mxu0 %v2211_v1  ;;  %1972 = vmatprep.mubr.msk.bf16.mxu1 %vm395_vm0, %v2213_v3  ;;  %v2223_v8 = vld [vmem:[#allocation5 + $0x18] sm:$0xff]   ;;  %v2217_v10 = vld [vmem:[%s2788_s2 + $0x20] sm:$0xff]   ;;  %v2221_v12 = vld [vmem:[%s2788_s2 + $0x30] sm:$0xff]   ;;  %s3121_s29 = scalar_lea.vmem [#allocation11], %s1862_s22  ;;  %s1923_s11 = sshll.u32 %s2467_s21, 4 }
  0xbf   : > { %1968 = vmatprep.subr.bf16.mxu1 %v2220_v7  ;;  %v2216_v9 = vld [vmem:[%s2788_s2 + $0x18] sm:$0xff]   ;;  %v2218_v11 = vld [vmem:[%s2788_s2 + $0x28] sm:$0xff]   ;;  %v2224_v14 = vld [vmem:[%s2788_s2 + $0x10] sm:$0xff]   ;;  %v847_v2 = vadd.s32 16, %v2885_v0  ;;  %vm1069_vm1 = vcmp.lt.s32.totalorder %v2885_v0, 1  ;;  %vm1310_vm9 = vcmp.lt.s32.totalorder %v2885_v0, 7 }
  0xc0   : > { %1969 = vmatpush3.bf16.msra.mxu1 %v2220_v7  ;;  %v2222_v13 = vld [vmem:[%s2788_s2 + $0x38] sm:$0xff]   ;;  %v2226_v16 = vld [vmem:[%s2788_s2 + $0x20] sm:$0xff]   ;;  %v2227_v18 = vld [vmem:[%s2788_s2 + $0x28] sm:$0xff]   ;;  %s1720_s9 = sshll.u32 %s3121_s29, 4  ;;  %s3243_s14 = sld [smem:[#allocation22_spill]]  ;;  %s3144_s9 = int_to_ptr.vmem [resolvable:$true] %s1720_s9 }
  0xc1   : > { %1991 = vmatpush3.bf16.msra.mxu0 %v2211_v1  ;;  %1970 = vmatprep.subr.bf16.mxu1 %v2223_v8  ;;  %v2225_v15 = vld [vmem:[%s2788_s2 + $0x18] sm:$0xff]   ;;  %v2231_v17 = vld [vmem:[%s2788_s2 + $0x40] sm:$0xff]   ;;  %v2228_v19 = vld [vmem:[%s2788_s2 + $0x30] sm:$0xff]   ;;  %s1705_s18 = scalar_lea.sflag [#allocation4], %s2784_s15  ;;  %s2377_s17 = scalar_lea.vmem %s3144_s9, 2048 }
  0xc2   : > { %2008 = vmatprep.subr.bf16.mxu0 %v2214_v4  ;;  %v2229_v20 = vld [vmem:[%s2788_s2 + $0x38] sm:$0xff]   ;;  %v2230_v21 = vld [vmem:[%s2788_s2 + $0x40] sm:$0xff]   ;;  %v2232_v22 = vld [vmem:[%s2788_s2 + $0x48] sm:$0xff]   ;;  %p2378_p8 = scmp.ne.s32.totalorder %s3144_s9, %s2377_s17  ;;  %s2495_s10 = smov [#allocation11]  }
  0xc3   : > { %s1924_s1 = sshll.u32 %s3242_s27, 5  ;;  %s2381_s2 = sshll.u32 %s2495_s10, 4  ;;  %s2382_s2 = int_to_ptr.vmem [resolvable:$false] %s2381_s2 }
  0xc4   : > { %1993 = vmatmul.mubr.msk.bf16.vlgmr.msra.gmra.mrb[0].mxu0 %vm395_vm0, %v2213_v3  ;;  %1971 = vmatpush3.bf16.msra.mxu1 %v2223_v8  ;;  %s1717_s3 = sadd.s32 %s1924_s1, %s1923_s11  ;;  %p2379_p10 = pnand %p2378_p8, %p2722_p3 }
  0xc5   : > { %2009 = vmatpush3.bf16.msra.mxu0 %v2214_v4  ;;  %1996 = vmatprep.mubr.msk.bf16.mxu0 %vm395_vm0, %v2215_v5  ;;  %s1925_s13 = sshll.u32 %s1717_s3, 7  ;;  %p2384_p5 = scmp.lt.s32.totalorder %s3144_s9, %s2382_s2 }
  0xc6   : > { %2010 = vmatprep.subr.bf16.mxu0 %v2219_v6  ;;  %s3142_s5 = scalar_lea.hbm %s3243_s14, %s1925_s13  ;;  %p2380_p0 = pneg %p2379_p10 }
  0xc7   : > { %1973 = vmatmul.mubr.msk.bf16.vlgmr.msra.gmra.mrb[0].mxu1 %vm395_vm0, %v2215_v5 }
  0xc8   : > { %1976 = vmatprep.mubr.msk.bf16.mxu1 %vm395_vm0, %v2216_v9 }
  0xc9   : > { %2011 = vmatpush3.bf16.msra.mxu0 %v2219_v6 }
  0xcc   : > { %1997 = vmatmul.mubr.msk.bf16.gmra.mrb[4].mxu0 %vm395_vm0, %v2216_v9 }
  0xcd   : > { %2000 = vmatprep.mubr.msk.bf16.mxu0 %vm395_vm0, %v2217_v10 }
  0xcf   : > { %1977 = vmatmul.mubr.msk.bf16.gmra.mrb[4].mxu1 %vm395_vm0, %v2217_v10 }
  0xd0   : > { %1980 = vmatprep.mubr.msk.bf16.mxu1 %vm395_vm0, %v2218_v11 }
  0xd4   : > { %2001 = vmatmul.mubr.msk.bf16.gmra.mrb[8].mxu0 %vm395_vm0, %v2218_v11  ;;  %v879_v11 = vand.u32 15, %v847_v2 }
  0xd5   : > { %2004 = vmatprep.mubr.msk.bf16.mxu0 %vm395_vm0, %v2221_v12 }
  0xd6   : > { %vm1088_vm2 = vcmp.eq.s32.totalorder %v879_v11, 0 }
  0xd7   : > { %1981 = vmatmul.mubr.msk.bf16.gmra.mrb[8].mxu1 %vm395_vm0, %v2221_v12 }
  0xd8   : > { %1984 = vmatprep.mubr.msk.bf16.mxu1 %vm395_vm0, %v2222_v13 }
  0xdc   : > { %2005 = vmatmul.mubr.msk.bf16.gmra.mrb[12].mxu0 %vm395_vm0, %v2222_v13 }
  0xdd   : > { %2012 = vmatprep.mubr.msk.bf16.mxu0 %vm395_vm0, %v2224_v14 }
  0xdf   : > { %1985 = vmatmul.mubr.msk.bf16.gmra.mrb[12].mxu1 %vm395_vm0, %v2231_v17 }
  0xe4   : > { %2013 = vmatmul.mubr.msk.bf16.vlgmr.msra.gmra.mrb[0].mxu0 %vm395_vm0, %v2225_v15 }
  0xe5   : > { %2016 = vmatprep.mubr.msk.bf16.mxu0 %vm395_vm0, %v2226_v16 }
  0xec   : > { %2017 = vmatmul.mubr.msk.bf16.gmra.mrb[4].mxu0 %vm395_vm0, %v2227_v18 }
  0xed   : > { %2020 = vmatprep.mubr.msk.bf16.mxu0 %vm395_vm0, %v2228_v19  ;;  %v849_v19 = vadd.s32 32, %v2885_v0 }
  0xf4   : > { %2021 = vmatmul.mubr.msk.bf16.gmra.mrb[8].mxu0 %vm395_vm0, %v2229_v20 }
  0xf5   : > { %2024 = vmatprep.mubr.msk.bf16.mxu0 %vm395_vm0, %v2230_v21 }
  0xfc   : > { %2025 = vmatmul.mubr.msk.bf16.gmra.mrb[12].mxu0 %vm395_vm0, %v2232_v22 }
 0x19a   : > { %v1974_v23 = vpop.f32.mrb[0].mxu1 }
 0x19b   : > { %v454_v24 = vpop.f32.mrb[1].mxu1 }
 0x19c   : > { %v1975_v25 = vpop.f32.mrb[2].mxu1 }
 0x19d   : > { %v457_v26 = vpop.f32.mrb[3].mxu1 }
 0x1a2   : > { %v1978_v27 = vpop.f32.mrb[4].mxu1 }
 0x1a3   : > { %v470_v28 = vpop.f32.mrb[5].mxu1 }
 0x1a4   : > { %v1979_v29 = vpop.f32.mrb[6].mxu1 }
 0x1a5   : > { %v473_v30 = vpop.f32.mrb[7].mxu1 }
 0x1aa   : > { %v1982_v31 = vpop.f32.mrb[8].mxu1 }
 0x1ab   : > { %v486_v32 = vpop.f32.mrb[9].mxu1 }
 0x1ac   : > { %v1983_v33 = vpop.f32.mrb[10].mxu1 }
 0x1ad   : > { %v489_v34 = vpop.f32.mrb[11].mxu1 }
 0x1b2   : > { %v1986_v40 = vpop.f32.mrb[12].mxu1 }
 0x1b3   : > { %v502_v43 = vpop.f32.mrb[13].mxu1 }
 0x1b4   : > { %v1987_v45 = vpop.f32.mrb[14].mxu1 }
 0x1b5   : > { %v505_v46 = vpop.f32.mrb[15].mxu1 }
 0x1b7   : > { %v2014_v35 = vpop.f32.mrb[0].mxu0 }
 0x1b8   : > { %v2843_v36 = vadd.f32 %v2014_v35, %v1974_v23  ;;  %v765_v37 = vpop.f32.mrb[1].mxu0 }
 0x1b9   : > { %v2845_v38 = vadd.f32 %v765_v37, %v454_v24  ;;  %v2015_v39 = vpop.f32.mrb[2].mxu0  ;;  %v851_v24 = vadd.s32 48, %v2885_v0 }
 0x1ba   : > { %v2847_v41 = vadd.f32 %v2015_v39, %v1975_v25  ;;  %1250 = vrot.lane.b32.xlu0 %v2843_v36, %s2492_s28  ;;  %v768_v42 = vpop.f32.mrb[3].mxu0  ;;  %v1055_v14 = vrot.slane %v2843_v36, 7 }
 0x1bb   : > { %v2851_v44 = vadd.f32 %v768_v42, %v457_v26  ;;  %1246 = vrot.lane.b32.xlu1 %v2845_v38, %s2492_s28  ;;  %v1053_v20 = vrot.slane %v2845_v38, 7  ;;  %v1910_v26 = vld [vmem:[#allocation7] ss:$0 sm:$0xff] }
 0x1bc   : > { %v1056_v22 = vrot.slane %v2847_v41, 7 }
 0x1bd   : > { %v1054_v9 = vrot.slane %v2851_v44, 7 }
 0x1be   : > { %1248 = vrot.lane.b32.xlu0 %v2851_v44, %s2492_s28 }
 0x1bf   : > { %1252 = vrot.lane.b32.xlu1 %v2847_v41, %s2492_s28  ;;  %v2018_v47 = vpop.f32.mrb[4].mxu0  ;;  %v1083_v17 = vsel %vm1069_vm1, %v1054_v9, %v1055_v14  ;;  %v1084_v23 = vsel %vm1069_vm1, %v1053_v20, %v1054_v9 }
 0x1c0   : > { %v2859_v48 = vadd.f32 %v2018_v47, %v1978_v27  ;;  %v781_v49 = vpop.f32.mrb[5].mxu0  ;;  %v1136_v21 = vsel %vm1088_vm2, 0.0, %v1083_v17  ;;  %v893_v27 = vand.u32 15, %v849_v19 }
 0x1c1   : > { %v2861_v50 = vadd.f32 %v781_v49, %v470_v28  ;;  %v2019_v51 = vpop.f32.mrb[6].mxu0 }
 0x1c2   : > { %v2863_v52 = vadd.f32 %v2019_v51, %v1979_v29  ;;  %v784_v53 = vpop.f32.mrb[7].mxu0  ;;  %v1082_v29 = vsel %vm1069_vm1, %v1055_v14, %v1056_v22  ;;  %vm1090_vm3 = vcmp.eq.s32.totalorder %v893_v27, 0 }
 0x1c3   : > { %v2865_v54 = vadd.f32 %v784_v53, %v473_v30  ;;  %1254 = vrot.lane.b32.xlu0 %v2861_v50, %s2492_s28  ;;  %v1057_v25 = vrot.slane %v2861_v50, 7  ;;  %v907_v30 = vand.u32 15, %v851_v24  ;;  %v857_v53 = vadd.s32 96, %v2885_v0 }
 0x1c4   : > { %1260 = vrot.lane.b32.xlu1 %v2863_v52, %s2492_s28 }
 0x1c5   : > { %v1058_v28 = vrot.slane %v2865_v54, 7  ;;  %vm1092_vm4 = vcmp.eq.s32.totalorder %v907_v30, 0 }
 0x1c7   : > { %1258 = vrot.lane.b32.xlu0 %v2859_v48, %s2492_s28  ;;  %v2022_v55 = vpop.f32.mrb[8].mxu0  ;;  %v1080_v35 = vsel %vm1069_vm1, %v1057_v25, %v1058_v28 }
 0x1c8   : > { %v2873_v57 = vadd.f32 %v2022_v55, %v1982_v31  ;;  %1256 = vrot.lane.b32.xlu1 %v2865_v54, %s2492_s28  ;;  %v797_v58 = vpop.f32.mrb[9].mxu0  ;;  %v1081_v31 = vsel %vm1069_vm1, %v1056_v22, %v1057_v25  ;;  %v848_v22 = vadd.s32 24, %v2885_v0 }
 0x1c9   : > { %v2877_v59 = vadd.f32 %v797_v58, %v486_v32  ;;  %v2023_v60 = vpop.f32.mrb[10].mxu0  ;;  %v853_v32 = vadd.s32 64, %v2885_v0  ;;  %v1138_v37 = vsel %vm1090_vm3, 0.0, %v1081_v31 }
 0x1ca   : > { %v2879_v61 = vadd.f32 %v2023_v60, %v1983_v33  ;;  %v800_v62 = vpop.f32.mrb[11].mxu0  ;;  %v1059_v33 = vrot.slane %v2859_v48, 7  ;;  %v1063_v55 = vrot.slane %v2873_v57, 7 }
 0x1cb   : > { %v2881_v63 = vadd.f32 %v800_v62, %v489_v34  ;;  %1262 = vrot.lane.b32.xlu0 %v2877_v59, %s2492_s28  ;;  %v1060_v34 = vrot.slane %v2863_v52, 7  ;;  %v1061_v39 = vrot.slane %v2877_v59, 7  ;;  %v921_v42 = vand.u32 15, %v853_v32 }
 0x1cc   : > { %1268 = vrot.lane.b32.xlu1 %v2879_v61, %s2492_s28  ;;  %v1064_v56 = vrot.slane %v2879_v61, 7  ;;  %v865_v62 = vand.u32 15, %v2885_v0 }
 0x1cd   : > { %v1077_v49 = vsel %vm1069_vm1, %v1060_v34, %v1061_v39  ;;  %vm1094_vm5 = vcmp.eq.s32.totalorder %v921_v42, 0 }
 0x1ce   : > { %v1142_v60 = vsel %vm1094_vm5, 0.0, %v1077_v49  ;;  %vm1086_vm7 = vcmp.eq.s32.totalorder %v865_v62, 0 }
 0x1cf   : > { %1266 = vrot.lane.b32.xlu0 %v2873_v57, %s2492_s28  ;;  %v2026_v1 = vpop.f32.mrb[12].mxu0 }
 0x1d0   : > { %v2892_v3 = vadd.f32 %v2026_v1, %v1986_v40  ;;  %1264 = vrot.lane.b32.xlu1 %v2881_v63, %s2492_s28  ;;  %v813_v4 = vpop.f32.mrb[13].mxu0  ;;  %v1079_v40 = vsel %vm1069_vm1, %v1058_v28, %v1059_v33  ;;  %v886_v28 = vand.u32 15, %v848_v22 }
 0x1d1   : > { %v2896_v5 = vadd.f32 %v813_v4, %v502_v43  ;;  %v2027_v6 = vpop.f32.mrb[14].mxu0  ;;  %v855_v43 = vadd.s32 80, %v2885_v0  ;;  %v1140_v47 = vsel %vm1092_vm4, 0.0, %v1079_v40  ;;  %v949_v4 = vand.u32 15, %v857_v53 }
 0x1d2   : > { %v2898_v7 = vadd.f32 %v2027_v6, %v1987_v45  ;;  %v816_v8 = vpop.f32.mrb[15].mxu0  ;;  %v1067_v12 = vrot.slane %v2892_v3, 7  ;;  %v1062_v45 = vrot.slane %v2881_v63, 7  ;;  %v1074_v6 = vsel %vm1069_vm1, %v1063_v55, %v1064_v56 }
 0x1d3   : > { %v2901_v10 = vadd.f32 %v816_v8, %v505_v46  ;;  %1270 = vrot.lane.b32.xlu0 %v2896_v5, %s2492_s28  ;;  %v1078_v46 = vsel %vm1069_vm1, %v1059_v33, %v1060_v34  ;;  %v935_v51 = vand.u32 15, %v855_v43  ;;  %v1065_v1 = vrot.slane %v2896_v5, 7 }
 0x1d4   : > { %v1068_v13 = vrot.slane %v2898_v7, 7  ;;  %1276 = vrot.lane.b32.xlu1 %v2898_v7, %s2492_s28  ;;  %v1076_v58 = vsel %vm1069_vm1, %v1061_v39, %v1062_v45  ;;  %v1075_v2 = vsel %vm1069_vm1, %v1062_v45, %v1063_v55  ;;  %vm1098_vm8 = vcmp.eq.s32.totalorder %v949_v4, 0 }
 0x1d5   : > { %v1066_v15 = vrot.slane %v2901_v10, 7  ;;  %vm1096_vm6 = vcmp.eq.s32.totalorder %v935_v51, 0  ;;  %v1073_v11 = vsel %vm1069_vm1, %v1064_v56, %v1065_v1  ;;  %vm1330_vm11 = vcmp.eq.s32.totalorder %v886_v28, 15 }
 0x1d6   : > { %v2916_v16 = vsel %vm1069_vm1, %v1067_v12, %v1068_v13  ;;  %v1144_v8 = vsel %vm1096_vm6, 0.0, %v1075_v2  ;;  %v1085_v9 = vsel %vm1069_vm1, %v1068_v13, %v1053_v20  ;;  %v1146_v14 = vsel %vm1098_vm8, 0.0, %v1073_v11 }
 0x1d7   : > { %1274 = vrot.lane.b32.xlu0 %v2892_v3, %s2492_s28  ;;  %v2926_v18 = vsel %vm1069_vm1, %v1066_v15, %v1067_v12  ;;  %v1134_v12 = vsel %vm1086_vm7, 0.0, %v1085_v9  ;;  %v1072_v17 = vsel %vm1069_vm1, %v1065_v1, %v1066_v15  ;;  %v846_v13 = vadd.s32 8, %v2885_v0 }
 0x1d8   : > { %1272 = vrot.lane.b32.xlu1 %v2901_v10, %s2492_s28  ;;  %v854_v2 = vadd.s32 72, %v2885_v0  ;;  %s2383_s28 = scalar_lea.vmem %s2382_s2, 4096 }
 0x1d9   : > { %p2385_p7 = scmp.lt.s32.totalorder %s2383_s28, %s2377_s17 }
 0x1db   : > { %1170 = vrot.lane.b32.xlu0 %v1136_v21, %s2493_s30  ;;  %v872_v21 = vand.u32 15, %v846_v13  ;;  %v856_v13 = vadd.s32 88, %v2885_v0  ;;  %p2386_p11 = por %p2385_p7, %p2384_p5 }
 0x1dc   : > { %1168 = vrot.lane.b32.xlu1 %v1084_v23, %s2493_s30 }
 0x1dd   : > { %vm1328_vm10 = vcmp.eq.s32.totalorder %v872_v21, 15  ;;  %v928_v21 = vand.u32 15, %v854_v2  ;;  %p2387_p1 = pnand %p2386_p11, %p2380_p0 }
 0x1df   : > { %1477 = vrot.lane.b32.xlu0 %v1910_v26, %s2493_s30  ;;  %vm1336_vm14 = vcmp.eq.s32.totalorder %v928_v21, 15 }
 0x1e0   : > { %1172 = vrot.lane.b32.xlu1 %v1082_v29, %s2493_s30  ;;  %v850_v29 = vadd.s32 40, %v2885_v0 }
 0x1e2   : > { %v900_v39 = vand.u32 15, %v850_v29 }
 0x1e3   : > { %1176 = vrot.lane.b32.xlu0 %v1080_v35, %s2493_s30 }
 0x1e4   : > { %1174 = vrot.lane.b32.xlu1 %v1138_v37, %s2493_s30  ;;  %v852_v37 = vadd.s32 56, %v2885_v0  ;;  %vm1332_vm12 = vcmp.eq.s32.totalorder %v900_v39, 15 }
 0x1e6   : > { %v914_v51 = vand.u32 15, %v852_v37 }
 0x1e7   : > { %1180 = vrot.lane.b32.xlu0 %v1078_v46, %s2493_s30 }
 0x1e8   : > { %1178 = vrot.lane.b32.xlu1 %v1140_v47, %s2493_s30  ;;  %vm1334_vm13 = vcmp.eq.s32.totalorder %v914_v51, 15  ;;  %v2233_v51 = vld [vmem:[#allocation8] sm:$0xff]  }
 0x1e9   : > { %2028 = vmatprep.subr.bf16.mxu1 %v2233_v51 }
 0x1ea   : > { %2029 = vmatpush3.bf16.msra.mxu1 %v2233_v51 }
 0x1eb   : > { %1184 = vrot.lane.b32.xlu0 %v1076_v58, %s2493_s30 }
 0x1ec   : > { %1182 = vrot.lane.b32.xlu1 %v1142_v60, %s2493_s30 }
 0x1ef   : > { %1188 = vrot.lane.b32.xlu0 %v1074_v6, %s2493_s30 }
 0x1f0   : > { %1186 = vrot.lane.b32.xlu1 %v1144_v8, %s2493_s30 }
 0x1f3   : > { %1166 = vrot.lane.b32.xlu0 %v1134_v12, %s2493_s30 }
 0x1f4   : > { %1190 = vrot.lane.b32.xlu1 %v1146_v14, %s2493_s30 }
 0x1f7   : > { %1192 = vrot.lane.b32.xlu0 %v1072_v17, %s2493_s30  ;;  %v859_v17 = vadd.s32 112, %v2885_v0 }
 0x22c   : > { %v1251_v19 = vpop.permute.xlu0 %1250 }
 0x22d   : > { %v2993_v20 = vpop.permute.xlu1 %1246  ;;  %v1296_v24 = vrot.slane %v1251_v19, 1 }
 0x22e   : > { %v1294_v33 = vrot.slane %v2993_v20, 1 }
 0x230   : > { %v1249_v23 = vpop.permute.xlu0 %1248 }
 0x231   : > { %v1295_v25 = vrot.slane %v1249_v23, 1  ;;  %v1253_v26 = vpop.permute.xlu1 %1252 }
 0x232   : > { %v1297_v27 = vrot.slane %v1253_v26, 1  ;;  %v942_v26 = vand.u32 15, %v856_v13 }
 0x233   : > { %v1324_v15 = vsel %vm1310_vm9, %v1295_v25, %v1296_v24  ;;  %v1325_v40 = vsel %vm1310_vm9, %v1294_v33, %v1295_v25  ;;  %v963_v25 = vand.u32 15, %v859_v17 }
 0x234   : > { %v1376_v30 = vsel %vm1328_vm10, 0.0, %v1324_v15  ;;  %v1323_v31 = vsel %vm1310_vm9, %v1296_v24, %v1297_v27  ;;  %v858_v15 = vadd.s32 104, %v2885_v0  ;;  %vm1338_vm1 = vcmp.eq.s32.totalorder %v942_v26, 15 }
 0x235   : > { %v1255_v32 = vpop.permute.xlu0 %1254  ;;  %1409 = vrot.lane.b32.xlu1 %v1376_v30, %s2493_s30  ;;  %1411 = vrot.lane.b32.xlu0 %v1323_v31, %s2493_s30  ;;  %vm1100_vm15 = vcmp.eq.s32.totalorder %v963_v25, 0 }
 0x236   : > { %v1298_v34 = vrot.slane %v1255_v32, 1  ;;  %v1261_v35 = vpop.permute.xlu1 %1260  ;;  %v956_v39 = vand.u32 15, %v858_v15 }
 0x237   : > { %v1301_v46 = vrot.slane %v1261_v35, 1 }
 0x238   : > { %v1322_v42 = vsel %vm1310_vm9, %v1297_v27, %v1298_v34  ;;  %vm1340_vm2 = vcmp.eq.s32.totalorder %v956_v39, 15 }
 0x239   : > { %v1259_v43 = vpop.permute.xlu0 %1258  ;;  %1407 = vrot.lane.b32.xlu0 %v1325_v40, %s2493_s30  ;;  %v1378_v45 = vsel %vm1330_vm11, 0.0, %v1322_v42  ;;  %v1148_v40 = vsel %vm1100_vm15, 0.0, %v2926_v18 }
 0x23a   : > { %v1300_v47 = vrot.slane %v1259_v43, 1  ;;  %v1257_v49 = vpop.permute.xlu1 %1256  ;;  %1413 = vrot.lane.b32.xlu1 %v1378_v45, %s2493_s30 }
 0x23b   : > { %v1299_v53 = vrot.slane %v1257_v49, 1 }
 0x23c   : > { %v1319_v55 = vsel %vm1310_vm9, %v1300_v47, %v1301_v46 }
 0x23d   : > { %v1263_v56 = vpop.permute.xlu0 %1262  ;;  %v1320_v58 = vsel %vm1310_vm9, %v1299_v53, %v1300_v47  ;;  %v1321_v8 = vsel %vm1310_vm9, %v1298_v34, %v1299_v53  ;;  %v860_v34 = vadd.s32 120, %v2885_v0  ;;  %v2234_v53 = vld [vmem:[#allocation8 + $0x8] sm:$0xff]  }
 0x23e   : > { %v1302_v60 = vrot.slane %v1263_v56, 1  ;;  %v1269_v62 = vpop.permute.xlu1 %1268  ;;  %1419 = vrot.lane.b32.xlu1 %v1319_v55, %s2493_s30  ;;  %v1380_v1 = vsel %vm1332_vm12, 0.0, %v1320_v58  ;;  %2030 = vmatprep.subr.bf16.mxu1 %v2234_v53 }
 0x23f   : > { %1417 = vrot.lane.b32.xlu0 %v1380_v1, %s2493_s30  ;;  %v1305_v11 = vrot.slane %v1269_v62, 1  ;;  %2031 = vmatpush3.bf16.msra.mxu1 %v2234_v53 }
 0x240   : > { %v1318_v4 = vsel %vm1310_vm9, %v1301_v46, %v1302_v60  ;;  %v970_v46 = vand.u32 15, %v860_v34 }
 0x241   : > { %v1267_v6 = vpop.permute.xlu0 %1266  ;;  %v1382_v9 = vsel %vm1334_vm13, 0.0, %v1318_v4 }
 0x242   : > { %v1304_v12 = vrot.slane %v1267_v6, 1  ;;  %v1265_v14 = vpop.permute.xlu1 %1264  ;;  %1415 = vrot.lane.b32.xlu1 %v1321_v8, %s2493_s30  ;;  %vm1342_vm3 = vcmp.eq.s32.totalorder %v970_v46, 15 }
 0x243   : > { %v1303_v19 = vrot.slane %v1265_v14, 1  ;;  %1421 = vrot.lane.b32.xlu0 %v1382_v9, %s2493_s30 }
 0x244   : > { %v1315_v22 = vsel %vm1310_vm9, %v1304_v12, %v1305_v11 }
 0x245   : > { %v1271_v23 = vpop.permute.xlu0 %1270  ;;  %v1316_v28 = vsel %vm1310_vm9, %v1303_v19, %v1304_v12  ;;  %v1317_v30 = vsel %vm1310_vm9, %v1302_v60, %v1303_v19 }
 0x246   : > { %v1277_v24 = vpop.permute.xlu1 %1276  ;;  %1427 = vrot.lane.b32.xlu1 %v1315_v22, %s2493_s30  ;;  %v1306_v27 = vrot.slane %v1271_v23, 1  ;;  %v1384_v32 = vsel %vm1336_vm14, 0.0, %v1316_v28 }
 0x247   : > { %1196 = vrot.lane.b32.xlu0 %v2916_v16, %s2493_s30  ;;  %v1309_v43 = vrot.slane %v1277_v24, 1 }
 0x248   : > { %v1314_v37 = vsel %vm1310_vm9, %v1305_v11, %v1306_v27 }
 0x249   : > { %v1275_v29 = vpop.permute.xlu0 %1274  ;;  %v1386_v42 = vsel %vm1338_vm1, 0.0, %v1314_v37  ;;  %v1326_v18 = vsel %vm1310_vm9, %v1309_v43, %v1294_v33 }
 0x24a   : > { %1423 = vrot.lane.b32.xlu1 %v1317_v30, %s2493_s30  ;;  %v1273_v31 = vpop.permute.xlu1 %1272  ;;  %v1308_v35 = vrot.slane %v1275_v29, 1  ;;  %v1390_v56 = vsel %vm1342_vm3, 0.0, %v1326_v18 }
 0x24b   : > { %v1307_v16 = vrot.slane %v1273_v31, 1  ;;  %1425 = vrot.lane.b32.xlu0 %v1384_v32, %s2493_s30 }
 0x24c   : > { %v1311_v55 = vsel %vm1310_vm9, %v1308_v35, %v1309_v43 }
 0x24d   : > { %v1312_v45 = vsel %vm1310_vm9, %v1307_v16, %v1308_v35  ;;  %v1313_v47 = vsel %vm1310_vm9, %v1306_v27, %v1307_v16  ;;  %v1171_v58 = vpop.permute.xlu0 %1170 }
 0x24e   : > { %1194 = vrot.lane.b32.xlu1 %v1148_v40, %s2493_s30  ;;  %v1388_v49 = vsel %vm1340_vm2, 0.0, %v1312_v45  ;;  %v1169_v60 = vpop.permute.xlu1 %1168  ;;  %v1216_v13 = vadd.f32 %v2843_v36, %v1171_v58 }
 0x24f   : > { %1429 = vrot.lane.b32.xlu0 %v1386_v42, %s2493_s30  ;;  %v1215_v17 = vadd.f32 %v2851_v44, %v1169_v60 }
 0x251   : > { %v3061_v62 = vpop.permute.xlu0 %1477 }
 0x252   : > { %1431 = vrot.lane.b32.xlu1 %v1313_v47, %s2493_s30  ;;  %v1173_v20 = vpop.permute.xlu1 %1172 }
 0x253   : > { %1433 = vrot.lane.b32.xlu0 %v1388_v49, %s2493_s30  ;;  %v1217_v25 = vadd.f32 %v2847_v41, %v1173_v20 }
 0x255   : > { %v1177_v1 = vpop.permute.xlu0 %1176 }
 0x256   : > { %1435 = vrot.lane.b32.xlu1 %v1311_v55, %s2493_s30  ;;  %v1175_v33 = vpop.permute.xlu1 %1174  ;;  %v1219_v31 = vadd.f32 %v2865_v54, %v1177_v1 }
 0x257   : > { %1437 = vrot.lane.b32.xlu0 %v1390_v56, %s2493_s30  ;;  %v1218_v43 = vadd.f32 %v2861_v50, %v1175_v33 }
 0x259   : > { %v1181_v2 = vpop.permute.xlu0 %1180 }
 0x25a   : > { %v1179_v4 = vpop.permute.xlu1 %1178  ;;  %v1221_v46 = vadd.f32 %v2863_v52, %v1181_v2 }
 0x25b   : > { %v1220_v32 = vadd.f32 %v2859_v48, %v1179_v4 }
 0x25d   : > { %v1185_v6 = vpop.permute.xlu0 %1184 }
 0x25e   : > { %v1183_v0 = vpop.permute.xlu1 %1182  ;;  %v1223_v2 = vadd.f32 %v2881_v63, %v1185_v6 }
 0x25f   : > { %v1222_v1 = vadd.f32 %v2877_v59, %v1183_v0 }
 0x261   : > { %v3063_v8 = vpop.permute.xlu0 %1188 }
 0x262   : > { %v1187_v9 = vpop.permute.xlu1 %1186  ;;  %v1225_v59 = vadd.f32 %v2879_v61, %v3063_v8 }
 0x263   : > { %v1224_v4 = vadd.f32 %v2873_v57, %v1187_v9 }
 0x265   : > { %v1167_v11 = vpop.permute.xlu0 %1166 }
 0x266   : > { %v3065_v12 = vpop.permute.xlu1 %1190  ;;  %v1214_v24 = vadd.f32 %v2845_v38, %v1167_v11 }
 0x269   : > { %v3067_v14 = vpop.permute.xlu0 %1192 }
 0x2a7   : > { %v1410_v19 = vpop.permute.xlu1 %1409  ;;  %v1412_v21 = vpop.permute.xlu0 %1411 }
 0x2a8   : > { %v1456_v22 = vadd.f32 %v1410_v19, %v1215_v17  ;;  %v1457_v23 = vadd.f32 %v1412_v21, %v1216_v13 }
 0x2aa   : > { %v1481_v27 = vadd.f32 %v3061_v62, %v1456_v22  ;;  %v1482_v29 = vadd.f32 %v3061_v62, %v1457_v23 }
 0x2ab   : > { %v1408_v26 = vpop.permute.xlu0 %1407 }
 0x2ac   : > { %v1455_v28 = vadd.f32 %v1408_v26, %v1214_v24  ;;  %v1414_v15 = vpop.permute.xlu1 %1413  ;;  %v1497_v34 = vmax.f32 %v1481_v27, 0.0  ;;  %v1498_v41 = vmax.f32 %v1482_v29, 0.0  ;;  %v1226_v26 = vadd.f32 %v2896_v5, %v3065_v12 }
 0x2ad   : > { %v1458_v30 = vadd.f32 %v1414_v15, %v1217_v25  ;;  %v1227_v27 = vadd.f32 %v2901_v10, %v3067_v14 }
 0x2ae   : > { %v1480_v44 = vadd.f32 %v3061_v62, %v1455_v28 }
 0x2af   : > { %v1483_v36 = vadd.f32 %v3061_v62, %v1458_v30 }
 0x2b0   : > { %v1496_v38 = vmax.f32 %v1480_v44, 0.0  ;;  %v1420_v35 = vpop.permute.xlu1 %1419 }
 0x2b1   : > { %v1499_v16 = vmax.f32 %v1483_v36, 0.0  ;;  %v1418_v37 = vpop.permute.xlu0 %1417  ;;  %v1461_v39 = vadd.f32 %v1420_v35, %v1220_v32 }
 0x2b2   : > { %v1460_v40 = vadd.f32 %v1418_v37, %v1219_v31  ;;  %v1512_v42 = vpack.c.bf16 %v1497_v34, %v1496_v38 }
 0x2b3   : > { %v1513_v45 = vpack.c.bf16 %v1499_v16, %v1498_v41  ;;  %v1486_v51 = vadd.f32 %v3061_v62, %v1461_v39 }
 0x2b4   : > { %v1416_v47 = vpop.permute.xlu1 %1415  ;;  %1539 = vrot.lane.b32.xlu1 %v1512_v42, %s2494_s7  ;;  %v1485_v48 = vadd.f32 %v3061_v62, %v1460_v40 }
 0x2b5   : > { %v1459_v54 = vadd.f32 %v1416_v47, %v1218_v43  ;;  %1541 = vrot.lane.b32.xlu0 %v1513_v45, %s2494_s7  ;;  %v1422_v49 = vpop.permute.xlu0 %1421  ;;  %v1502_v60 = vmax.f32 %v1486_v51, 0.0  ;;  %v1911_v51 = vld [vmem:[#allocation10] ss:$0 sm:$0xff] }
 0x2b6   : > { %v1462_v53 = vadd.f32 %v1422_v49, %v1221_v46  ;;  %v1501_v56 = vmax.f32 %v1485_v48, 0.0 }
 0x2b7   : > { %v1484_v18 = vadd.f32 %v3061_v62, %v1459_v54 }
 0x2b8   : > { %v1487_v50 = vadd.f32 %v3061_v62, %v1462_v53  ;;  %v1428_v55 = vpop.permute.xlu1 %1427 }
 0x2b9   : > { %v1500_v52 = vmax.f32 %v1484_v18, 0.0  ;;  %v1197_v58 = vpop.permute.xlu0 %1196  ;;  %v1465_v21 = vadd.f32 %v1428_v55, %v1224_v4 }
 0x2ba   : > { %v1503_v20 = vmax.f32 %v1487_v50, 0.0  ;;  %v1229_v5 = vadd.f32 %v2898_v7, %v1197_v58 }
 0x2bb   : > { %v1514_v33 = vpack.c.bf16 %v1501_v56, %v1500_v52  ;;  %v1490_v9 = vadd.f32 %v3061_v62, %v1465_v21 }
 0x2bc   : > { %v1424_v11 = vpop.permute.xlu1 %1423  ;;  %v1515_v17 = vpack.c.bf16 %v1503_v20, %v1502_v60 }
 0x2bd   : > { %v1463_v13 = vadd.f32 %v1424_v11, %v1222_v1  ;;  %v1426_v19 = vpop.permute.xlu0 %1425  ;;  %1543 = vrot.lane.b32.xlu1 %v1514_v33, %s2494_s7  ;;  %v1506_v30 = vmax.f32 %v1490_v9, 0.0 }
 0x2be   : > { %v1464_v22 = vadd.f32 %v1426_v19, %v1223_v2  ;;  %1545 = vrot.lane.b32.xlu0 %v1515_v17, %s2494_s7 }
 0x2bf   : > { %v1488_v23 = vadd.f32 %v3061_v62, %v1463_v13 }
 0x2c0   : > { %v1489_v0 = vadd.f32 %v3061_v62, %v1464_v22  ;;  %v1195_v63 = vpop.permute.xlu1 %1194 }
 0x2c1   : > { %v1504_v6 = vmax.f32 %v1488_v23, 0.0  ;;  %v1430_v57 = vpop.permute.xlu0 %1429  ;;  %v1228_v31 = vadd.f32 %v2892_v3, %v1195_v63 }
 0x2c2   : > { %v1505_v24 = vmax.f32 %v1489_v0, 0.0  ;;  %v1466_v25 = vadd.f32 %v1430_v57, %v1225_v59 }
 0x2c4   : > { %v1491_v28 = vadd.f32 %v3061_v62, %v1466_v25  ;;  %v1432_v15 = vpop.permute.xlu1 %1431  ;;  %v1516_v29 = vpack.c.bf16 %v1505_v24, %v1504_v6 }
 0x2c5   : > { %v1467_v61 = vadd.f32 %v1432_v15, %v1226_v26  ;;  %v1434_v8 = vpop.permute.xlu0 %1433 }
 0x2c6   : > { %v1507_v44 = vmax.f32 %v1491_v28, 0.0  ;;  %v1468_v36 = vadd.f32 %v1434_v8, %v1227_v27  ;;  %1547 = vrot.lane.b32.xlu1 %v1516_v29, %s2494_s7 }
 0x2c7   : > { %v1492_v32 = vadd.f32 %v3061_v62, %v1467_v61 }
 0x2c8   : > { %v1493_v12 = vadd.f32 %v3061_v62, %v1468_v36  ;;  %v1436_v10 = vpop.permute.xlu1 %1435  ;;  %v1517_v14 = vpack.c.bf16 %v1507_v44, %v1506_v30 }
 0x2c9   : > { %v1508_v34 = vmax.f32 %v1492_v32, 0.0  ;;  %v1469_v38 = vadd.f32 %v1436_v10, %v1228_v31  ;;  %v1438_v35 = vpop.permute.xlu0 %1437 }
 0x2ca   : > { %v1509_v41 = vmax.f32 %v1493_v12, 0.0  ;;  %v1470_v16 = vadd.f32 %v1438_v35, %v1229_v5  ;;  %1549 = vrot.lane.b32.xlu0 %v1517_v14, %s2494_s7 }
 0x2cb   : > { %v1494_v37 = vadd.f32 %v3061_v62, %v1469_v38 }
 0x2cc   : > { %v1495_v39 = vadd.f32 %v3061_v62, %v1470_v16  ;;  %v1518_v3 = vpack.c.bf16 %v1509_v41, %v1508_v34 }
 0x2cd   : > { %v1510_v40 = vmax.f32 %v1494_v37, 0.0 }
 0x2ce   : > { %v1511_v42 = vmax.f32 %v1495_v39, 0.0  ;;  %1551 = vrot.lane.b32.xlu1 %v1518_v3, %s2494_s7 }
 0x2d0   : > { %v1519_v7 = vpack.c.bf16 %v1511_v42, %v1510_v40 }
 0x2d2   : > { %1553 = vrot.lane.b32.xlu0 %v1519_v7, %s2494_s7 }
 0x326   : > { %v1540_v43 = vpop.permute.xlu1 %1539 }
 0x327   : > { %v1542_v45 = vpop.permute.xlu0 %1541  ;;  %2032 = vmatprep.mubr.msk.bf16.mxu1 %vm395_vm0, %v1540_v43 }
 0x328   : > { %2033 = vmatmul.mubr.msk.bf16.vlgmr.msra.gmra.mrb[16].mxu1 %vm395_vm0, %v1542_v45 }
 0x32f   : > { %v1544_v46 = vpop.permute.xlu1 %1543 }
 0x330   : > { %v1546_v47 = vpop.permute.xlu0 %1545  ;;  %2036 = vmatprep.mubr.msk.bf16.mxu1 %vm395_vm0, %v1544_v46 }
 0x331   : > { %2037 = vmatmul.mubr.msk.bf16.gmra.mrb[20].mxu1 %vm395_vm0, %v1546_v47 }
 0x338   : > { %v1548_v62 = vpop.permute.xlu1 %1547 }
 0x339   : > { %2040 = vmatprep.mubr.msk.bf16.mxu1 %vm395_vm0, %v1548_v62 }
 0x33c   : > { %v1550_v48 = vpop.permute.xlu0 %1549 }
 0x33d   : > { %2041 = vmatmul.mubr.msk.bf16.gmra.mrb[24].mxu1 %vm395_vm0, %v1550_v48 }
 0x340   : > { %v1552_v54 = vpop.permute.xlu1 %1551 }
 0x341   : > { %2044 = vmatprep.mubr.msk.bf16.mxu1 %vm395_vm0, %v1552_v54 }
 0x344   : > { %v1554_v49 = vpop.permute.xlu0 %1553 }
 0x345   : > { %2045 = vmatmul.mubr.msk.bf16.gmra.mrb[28].mxu1 %vm395_vm0, %v1554_v49 }
 0x3fb   : > { %v2034_v53 = vpop.f32.mrb[16].mxu1 }
 0x3fc   : > { %v1634_v18 = vadd.f32 %v2034_v53, %v1911_v51  ;;  %v1625_v50 = vpop.f32.mrb[17].mxu1 }
 0x3fd   : > { %v1626_v55 = vadd.f32 %v1911_v51, %v1625_v50  ;;  %v2035_v56 = vpop.f32.mrb[18].mxu1 }
 0x3fe   : > { %1690 = vst [vmem:[%s3121_s29 + $0x10] sm:$0xff] %v1634_v18  ;;  %v1637_v52 = vadd.f32 %v2035_v56, %v1911_v51  ;;  %v1628_v58 = vpop.f32.mrb[19].mxu1 }
 0x3ff   : > { %1688 = vst [vmem:[%s3121_s29] sm:$0xff] %v1626_v55  ;;  %v1629_v60 = vadd.f32 %v1911_v51, %v1628_v58 }
 0x400   : > { %1691 = vst [vmem:[%s3121_s29 + $0x18] sm:$0xff] %v1637_v52 }
 0x401   : > { %1689 = vst [vmem:[%s3121_s29 + $0x8] sm:$0xff] %v1629_v60 }
 0x404   : > { %v2038_v20 = vpop.f32.mrb[20].mxu1 }
 0x405   : > { %v1650_v1 = vadd.f32 %v2038_v20, %v1911_v51  ;;  %v1641_v33 = vpop.f32.mrb[21].mxu1 }
 0x406   : > { %v1642_v2 = vadd.f32 %v1911_v51, %v1641_v33  ;;  %v2039_v4 = vpop.f32.mrb[22].mxu1 }
 0x407   : > { %1694 = vst [vmem:[%s3121_s29 + $0x30] sm:$0xff] %v1650_v1  ;;  %v1653_v11 = vadd.f32 %v2039_v4, %v1911_v51  ;;  %v1644_v17 = vpop.f32.mrb[23].mxu1 }
 0x408   : > { %1692 = vst [vmem:[%s3121_s29 + $0x20] sm:$0xff] %v1642_v2  ;;  %v1645_v13 = vadd.f32 %v1911_v51, %v1644_v17 }
 0x409   : > { %1695 = vst [vmem:[%s3121_s29 + $0x38] sm:$0xff] %v1653_v11 }
 0x40a   : > { %1693 = vst [vmem:[%s3121_s29 + $0x28] sm:$0xff] %v1645_v13 }
 0x410   : > { %v2042_v19 = vpop.f32.mrb[24].mxu1 }
 0x411   : > { %v1666_v21 = vadd.f32 %v2042_v19, %v1911_v51  ;;  %v1657_v22 = vpop.f32.mrb[25].mxu1 }
 0x412   : > { %v1658_v23 = vadd.f32 %v1911_v51, %v1657_v22  ;;  %v2043_v59 = vpop.f32.mrb[26].mxu1 }
 0x413   : > { %1698 = vst [vmem:[%s3121_s29 + $0x50] sm:$0xff] %v1666_v21  ;;  %v1669_v0 = vadd.f32 %v2043_v59, %v1911_v51  ;;  %v1660_v63 = vpop.f32.mrb[27].mxu1 }
 0x414   : > { %1696 = vst [vmem:[%s3121_s29 + $0x40] sm:$0xff] %v1658_v23  ;;  %v1661_v6 = vadd.f32 %v1911_v51, %v1660_v63 }
 0x415   : > { %1699 = vst [vmem:[%s3121_s29 + $0x58] sm:$0xff] %v1669_v0 }
 0x416   : > { %1697 = vst [vmem:[%s3121_s29 + $0x48] sm:$0xff] %v1661_v6 }
 0x418   : > { %v2046_v57 = vpop.f32.mrb[28].mxu1 }
 0x419   : > { %v1682_v9 = vadd.f32 %v2046_v57, %v1911_v51  ;;  %v1673_v24 = vpop.f32.mrb[29].mxu1 }
 0x41a   : > { %v1674_v25 = vadd.f32 %v1911_v51, %v1673_v24  ;;  %v2047_v26 = vpop.f32.mrb[30].mxu1 }
 0x41b   : > { %1702 = vst [vmem:[%s3121_s29 + $0x70] sm:$0xff] %v1682_v9  ;;  %v1685_v27 = vadd.f32 %v2047_v26, %v1911_v51  ;;  %v1676_v28 = vpop.f32.mrb[31].mxu1 }
 0x41c   : > { %1700 = vst [vmem:[%s3121_s29 + $0x60] sm:$0xff] %v1674_v25  ;;  %v1677_v15 = vadd.f32 %v1911_v51, %v1676_v28 }
 0x41d   : > { %1703 = vst [vmem:[%s3121_s29 + $0x78] sm:$0xff] %v1685_v27 }
 0x41e   : > { %1701 = vst [vmem:[%s3121_s29 + $0x68] sm:$0xff] %v1677_v15 }
 0x41f   : > { %2390 = shalt.err (!%p2387_p1)
}
 0x420   : > { %s2391_s30 = scalar_lea.hbm %s3142_s5, 2048  ;;  %s2395_s29 = scalar_lea.hbm %s3243_s14, 8192 }
 0x421   : > { %p2392_p12 = scmp.ne.s32.totalorder %s3142_s5, %s2391_s30  ;;  %p2396_p13 = scmp.lt.u32.totalorder %s3142_s5, %s3243_s14 }
 0x422   : > { %p2397_p4 = scmp.lt.u32.totalorder %s2395_s29, %s2391_s30  ;;  %p2399_p8 = scmp.lt.u32.totalorder %s2391_s30, %s3142_s5 }
 0x423   : > { %p2393_p6 = pnand %p2392_p12, %p2722_p3 }
 0x424   : > { %p2398_p9 = por %p2397_p4, %p2396_p13 }
 0x425   : > { %p2394_p2 = pneg %p2393_p6 }
 0x426   : > { %p2400_p10 = por %p2399_p8, %p2398_p9 }
 0x428   : > { %p2401_p0 = pnand %p2400_p10, %p2394_p2 }
 0x42a   : > { %2404 = shalt.err (!%p2401_p0)
}
 0x42b   : > { %s2496_s1 = smov 128   ;;  %s2497_s3 = smov 8  }
 0x42c   : > { %2102 = dma.vmem_to_hbm [thread:$0]  (%p2722_p3), %s3144_s9, 2048, %s3142_s5, %s1705_s18, %s2496_s1, %s2496_s1, %s2497_s3  }
 0x42d PF: > { %s3244_s13 = sld [smem:[#allocation16_spill]]  ;;  %s3245_s21 = sld [smem:[#allocation18_spill]] }
 0x42e   : > { %p2134_p5 = scmp.ge.s32.totalorder %s2483_s25, 2 }
 0x433   : > { %s1735_s12 = sand.u32 1, %s3244_s13   ;;  %p3246_p7 = scmp.ne.s32.totalorder %s3245_s21, 0 }
 0x434   : > { %s1736_s17 = scalar_lea.sflag [#allocation4], %s1735_s12 }
 0x435   : > { %p2122_p11 = pnand %p2134_p5, %p3246_p7 }
 0x437   : > { %2450 = dma.done.wait (!%p2122_p11), %s1736_s17, 2048  }
 0x438   : > { %2452 = vsyncadd (!%p2122_p11), %s1736_s17, 4294965248  ;;  %s23_s25 = sadd.s32 1, %s2483_s25   ;;  %s3247_s18 = smov %s2459_s19 }
 0x439   : > { %p20_p1 = scmp.ge.s32.totalorder %s23_s25, 6   ;;  %s3248_s19 = smov %s2463_s20 }
 0x43a   : > { %s3249_s20 = smov %s2741_s16  ;;  %s3250_s21 = smov %s2475_s23 }
 0x43b   : > { %s3251_s22 = smov %s2479_s24  ;;  %s3252_s23 = smov %s3255_s8 }
 0x43c   : > { %s3253_s24 = smov %s3259_s26  ;;  %22 = sbr.rel (!%p20_p1) target bundleno = 14 (0xe), region = 103 }
 0x443   :  { %1741 = vsyncpa [#allocation3], 1 }
 0x444   :  { %1743 = vsyncpa [#allocation3 + $0x1], 1 }
 0x445   :  { %1744 = vsyncpa [#allocation6], 1 }
 0x446   :  { %1745 = vsyncpa [#allocation9], 1 }
 0x447   :  { %1746 = vsyncpa [#allocation4], 1 }
 0x448   :  { %1748 = vsyncpa [#allocation4 + $0x1], 1 }

</bundles_post_ra>
